<compile_context>
chip_gen: v5e
topology: v5e:2x2
jax: 0.10.0
libtpu: 0.0.40
codegen_flags: <defaults>
</compile_context>

<pallas_src>
import jax
import jax.numpy as jnp
from jax.experimental import pallas as pl
from jax.experimental.pallas import tpu as pltpu

N_GRAPHEME = 168
N_VOWEL = 11
N_CONSONANT = 7
NUM_CLASSES = N_GRAPHEME + N_VOWEL + N_CONSONANT  # 186
NUM_CLASSES_PAD = 256  # next multiple of 128 -> lane-dense (unmasked) stores

# Per-buffer VMEM budget for the feature tile. 2 buffers (double-buffered
# input) + 2x the resident weight tile must stay under v5e's 16 MiB default
# scoped VMEM and well inside v7x's ~24-28 MiB usable per TensorCore.
_FEATURE_TILE_BUDGET_BYTES = 4 * 1024 * 1024


def _round_up(x, m):
    return ((x + m - 1) // m) * m


def _pick_batch_tile(batch, hw, channels, dtype_bytes):
    """Largest multiple-of-8 batch tile whose feature slab fits the budget."""
    row_bytes = hw * channels * dtype_bytes
    tb = (_FEATURE_TILE_BUDGET_BYTES // max(row_bytes, 1)) // 8 * 8
    tb = max(tb, 8)                          # at least one f32 sublane group
    tb = min(tb, _round_up(batch, 8))        # never larger than padded batch
    return tb


def _head_kernel(x_ref, w_ref, b_ref, o_ref):
    # x_ref: (TB, HW, C)   features, channels on the lane axis
    # w_ref: (C, NCp)      fc weight, pre-transposed, pre-scaled by 1/HW, padded
    # b_ref: (1, NCp)      fc bias, lane-padded
    # o_ref: (TB, NCp)     logits, lane-padded
    x = x_ref[...].astype(jnp.float32)                    # VPU upcast (bf16 ok)
    pooled = jnp.sum(x, axis=1)                           # sublane reduce -> (TB, C)
    logits = jnp.dot(pooled, w_ref[...],
                     preferred_element_type=jnp.float32)  # MXU -> (TB, NCp)
    o_ref[...] = logits + b_ref[...]                      # bias broadcast


def prepare_head_params(fc_weight, fc_bias, hw):
    """Once-per-model parameter prep (hoisted out of the per-call path).

    fc_weight: (NUM_CLASSES, C)  PyTorch nn.Linear layout
    fc_bias:   (NUM_CLASSES,)
    hw:        H*W of the backbone feature map (pooling divisor, folded into w)
    returns (w_pad, b_pad): (C, 256) f32, (1, 256) f32
    """
    c = fc_weight.shape[1]
    w_t = jnp.transpose(fc_weight, (1, 0)).astype(jnp.float32) * (1.0 / float(hw))
    w_pad = jnp.zeros((c, NUM_CLASSES_PAD), jnp.float32).at[:, :NUM_CLASSES].set(w_t)
    b_pad = jnp.zeros((1, NUM_CLASSES_PAD), jnp.float32).at[0, :NUM_CLASSES].set(
        fc_bias.astype(jnp.float32))
    return w_pad, b_pad


@jax.jit
def bengali_head(features_nchw, w_pad, b_pad):
    """features_nchw: (B, C, H, W) f32 or bf16 (PyTorch NCHW layout).
    w_pad, b_pad: from prepare_head_params (1/HW already folded into w_pad).
    returns: (B, NUM_CLASSES) float32 logits.
    """
    B, C, H, W = features_nchw.shape
    HW = H * W
    # Present channels on the lane axis: (B, HW, C).
    # TODO(synk): if the backbone emits NHWC directly this transpose is free.
    x = jnp.transpose(features_nchw, (0, 2, 3, 1)).reshape(B, HW, C)

    dtype_bytes = jnp.dtype(x.dtype).itemsize
    tb = _pick_batch_tile(B, HW, C, dtype_bytes)
    bp = _round_up(B, tb)
    if bp != B:
        x = jnp.pad(x, ((0, bp - B), (0, 0), (0, 0)))

    cost = pl.CostEstimate(
        flops=2 * bp * C * NUM_CLASSES_PAD + bp * HW * C,
        transcendentals=0,
        bytes_accessed=(bp * HW * C * dtype_bytes
                        + C * NUM_CLASSES_PAD * 4
                        + bp * NUM_CLASSES_PAD * 4),
    )

    out_padded = pl.pallas_call(
        _head_kernel,
        out_shape=jax.ShapeDtypeStruct((bp, NUM_CLASSES_PAD), jnp.float32),
        grid_spec=pltpu.PrefetchScalarGridSpec(
            num_scalar_prefetch=0,
            grid=(bp // tb,),
            in_specs=[
                pl.BlockSpec((tb, HW, C), lambda i: (i, 0, 0)),
                pl.BlockSpec((C, NUM_CLASSES_PAD), lambda i: (0, 0)),   # resident
                pl.BlockSpec((1, NUM_CLASSES_PAD), lambda i: (0, 0)),   # resident
            ],
            out_specs=pl.BlockSpec((tb, NUM_CLASSES_PAD), lambda i: (i, 0)),
        ),
        compiler_params=pltpu.CompilerParams(
            dimension_semantics=("parallel",)),
        cost_estimate=cost,
    )(x, w_pad, b_pad)

    return out_padded[:B, :NUM_CLASSES]


def _reference(features_nchw, fc_weight, fc_bias):
    pooled = jnp.mean(features_nchw.astype(jnp.float32), axis=(2, 3))  # (B, C)
    return pooled @ fc_weight.T + fc_bias                              # (B, 186)


if __name__ == "__main__":
    key = jax.random.PRNGKey(0)
    k_x, k_w, k_b = jax.random.split(key, 3)

    # Small backbone-feature-like shapes: batch=2, channels=128, spatial=8x8
    # (real EfficientNet features are C>=1280, HW~49-64; 128 keeps lanes dense).
    B, C, H, W = 2, 128, 8, 8
    features = jax.random.normal(k_x, (B, C, H, W), dtype=jnp.float32)

    # Deterministic nn.Linear-style init (uniform +-1/sqrt(C)).
    bound = 1.0 / jnp.sqrt(jnp.float32(C))
    fc_weight = jax.random.uniform(k_w, (NUM_CLASSES, C), jnp.float32,
                                   minval=-bound, maxval=bound)
    fc_bias = jax.random.uniform(k_b, (NUM_CLASSES,), jnp.float32,
                                 minval=-bound, maxval=bound)

    w_pad, b_pad = prepare_head_params(fc_weight, fc_bias, hw=H * W)

    # f32 path
    out = jax.block_until_ready(bengali_head(features, w_pad, b_pad))
    ref = _reference(features, fc_weight, fc_bias)
    assert out.shape == (B, NUM_CLASSES), out.shape
    assert jnp.allclose(out, ref, atol=1e-4, rtol=1e-4), "f32 mismatch vs reference"

    # bf16-features path (halves HBM traffic of the bandwidth-bound read)
    features_bf16 = features.astype(jnp.bfloat16)
    out_bf16 = jax.block_until_ready(bengali_head(features_bf16, w_pad, b_pad))
    ref_bf16 = _reference(features_bf16, fc_weight, fc_bias)
    assert jnp.allclose(out_bf16, ref_bf16, atol=1e-3, rtol=1e-3), \
        "bf16 mismatch vs reference"

    print("KERNEL_OK")
</pallas_src>

<mosaic_0001>
module attributes {stable_mosaic.version = 11 : i64} {
  func.func @_head_kernel(%arg0: i32, %arg1: memref<8x64x128xf32, #tpu.memory_space<vmem>>, %arg2: memref<128x256xf32, #tpu.memory_space<vmem>>, %arg3: memref<1x256xf32, #tpu.memory_space<vmem>>, %arg4: memref<8x256xf32, #tpu.memory_space<vmem>>) attributes {dimension_semantics = [#tpu.dimension_semantics<parallel>], iteration_bounds = array<i64: 1>, scalar_prefetch = 0 : i64, scratch_operands = 0 : i64, tpu.core_type = #tpu.core_type<tc>, window_params = [{transform_indices = @transform_0, window_bounds = array<i64: 8, 64, 128>}, {pipeline_mode = #tpu.pipeline_mode<synchronous>, transform_indices = @transform_1, window_bounds = array<i64: 128, 256>}, {pipeline_mode = #tpu.pipeline_mode<synchronous>, transform_indices = @transform_2, window_bounds = array<i64: 1, 256>}, {transform_indices = @transform_3, window_bounds = array<i64: 8, 256>}]} {
    %c0 = arith.constant 0 : index
    %c0_0 = arith.constant 0 : index
    %c0_1 = arith.constant 0 : index
    %0 = vector.load %arg1[%c0, %c0_0, %c0_1] : memref<8x64x128xf32, #tpu.memory_space<vmem>>, vector<8x64x128xf32>
    %cst = arith.constant dense<0.000000e+00> : vector<8x128xf32>
    %1 = vector.multi_reduction <add>, %0, %cst [1] : vector<8x64x128xf32> to vector<8x128xf32>
    %c0_2 = arith.constant 0 : index
    %c0_3 = arith.constant 0 : index
    %2 = vector.load %arg2[%c0_2, %c0_3] : memref<128x256xf32, #tpu.memory_space<vmem>>, vector<128x256xf32>
    %cst_4 = arith.constant dense<0.000000e+00> : vector<8x256xf32>
    %3 = tpu.matmul %1, %2, %cst_4 {dimension_numbers = #tpu.dot_dimension_numbers<[1], [0], [0], [1], [0, 0, 1, 1], [], []>} : vector<8x128xf32>, vector<128x256xf32>, vector<8x256xf32> -> vector<8x256xf32>
    %c0_5 = arith.constant 0 : index
    %c0_6 = arith.constant 0 : index
    %4 = vector.load %arg3[%c0_5, %c0_6] : memref<1x256xf32, #tpu.memory_space<vmem>>, vector<1x256xf32>
    %5 = vector.broadcast %4 : vector<1x256xf32> to vector<8x256xf32>
    %6 = arith.addf %3, %5 : vector<8x256xf32>
    %c0_7 = arith.constant 0 : index
    %c0_8 = arith.constant 0 : index
    %7 = vector.load %arg4[%c0_7, %c0_8] : memref<8x256xf32, #tpu.memory_space<vmem>>, vector<8x256xf32>
    tpu.vector_store %arg4[%c0_7, %c0_8], %6 {strides = array<i32>} : memref<8x256xf32, #tpu.memory_space<vmem>>, vector<8x256xf32>,
    return
  }
  func.func @transform_0(%arg0: i32) -> (i32, i32, i32) {
    %c0_i32 = arith.constant 0 : i32
    %c0_i32_0 = arith.constant 0 : i32
    %c0_i32_1 = arith.constant 0 : i32
    return %arg0, %c0_i32, %c0_i32_0 : i32, i32, i32
  }
  func.func @transform_1(%arg0: i32) -> (i32, i32) {
    %c0_i32 = arith.constant 0 : i32
    %c0_i32_0 = arith.constant 0 : i32
    %c0_i32_1 = arith.constant 0 : i32
    return %c0_i32, %c0_i32_0 : i32, i32
  }
  func.func @transform_2(%arg0: i32) -> (i32, i32) {
    %c0_i32 = arith.constant 0 : i32
    %c0_i32_0 = arith.constant 0 : i32
    %c0_i32_1 = arith.constant 0 : i32
    return %c0_i32, %c0_i32_0 : i32, i32
  }
  func.func @transform_3(%arg0: i32) -> (i32, i32) {
    %c0_i32 = arith.constant 0 : i32
    %c0_i32_0 = arith.constant 0 : i32
    return %arg0, %c0_i32 : i32, i32
  }
}

</mosaic_0001>

<bundles_post_ra>
// kernel: bengali_head.1
= control target key start
LH: loop header
LB: loop body
LE: loop exit
PB: predicated region body
PF: predicated region fallthrough
CT: control target
= control target key end

     0   :  { %vm228_vm0 = vcmask 1041409   ;;  %vm230_vm1 = vcmask 1042434   ;;  %vm232_vm2 = vcmask 1043459   ;;  %vm234_vm3 = vcmask 1044484   ;;  %s607_s1 = inlined_call_operand.vmem [shape: f32[128,256], index: 1, kind: input, shape index: {}]   ;;  %s608_s0 = inlined_call_operand.vmem [shape: f32[8,64,128], index: 0, kind: input, shape index: {}]   ;;  %s609_s2 = inlined_call_operand.vmem [shape: f32[1,256], index: 2, kind: input, shape index: {}]   ;;  %s610_s3 = inlined_call_operand.vmem [shape: f32[8,256], index: 3, kind: output, shape index: {}]  }
   0x1   :  { %v212_v0 = vld [vmem:[%s607_s1 + $0xf0] sm:$0xff]  ;;  %v213_v1 = vld [vmem:[%s607_s1 + $0xf8] sm:$0xff]  ;;  %v210_v2 = vld [vmem:[%s607_s1 + $0xe0] sm:$0xff]  ;;  %vm236_vm4 = vcmask 1045509   ;;  %vm238_vm5 = vcmask 1046534   ;;  %vm240_vm6 = vcmask 1047559  }
   0x2   :  { %243 = vmatpush.msra.mxu0 %v212_v0  ;;  %263 = vmatpush.msra.mxu1 %v213_v1  ;;  %v211_v3 = vld [vmem:[%s607_s1 + $0xe8] sm:$0xff]  ;;  %v208_v4 = vld [vmem:[%s607_s1 + $0xd0] sm:$0xff]  ;;  %v209_v5 = vld [vmem:[%s607_s1 + $0xd8] sm:$0xff] }
   0x3   :  { %v206_v6 = vld [vmem:[%s607_s1 + $0xc0] sm:$0xff]  ;;  %v207_v7 = vld [vmem:[%s607_s1 + $0xc8] sm:$0xff]  ;;  %v204_v8 = vld [vmem:[%s607_s1 + $0xb0] sm:$0xff] }
   0x4   :  { %244 = vmatpush.msra.mxu0 %v210_v2  ;;  %264 = vmatpush.msra.mxu1 %v211_v3  ;;  %v205_v9 = vld [vmem:[%s607_s1 + $0xb8] sm:$0xff]  ;;  %v202_v10 = vld [vmem:[%s607_s1 + $0xa0] sm:$0xff]  ;;  %v203_v11 = vld [vmem:[%s607_s1 + $0xa8] sm:$0xff] }
   0x5   :  { %v200_v12 = vld [vmem:[%s607_s1 + $0x90] sm:$0xff]  ;;  %v201_v13 = vld [vmem:[%s607_s1 + $0x98] sm:$0xff]  ;;  %v14_v14 = vld [vmem:[%s608_s0] sm:$0xff] }
   0x6   :  { %245 = vmatpush.msra.mxu0 %v208_v4  ;;  %265 = vmatpush.msra.mxu1 %v209_v5  ;;  %v15_v15 = vld [vmem:[%s608_s0 + $0x8] sm:$0xff]  ;;  %v16_v16 = vld [vmem:[%s608_s0 + $0x10] sm:$0xff]  ;;  %v198_v17 = vld [vmem:[%s607_s1 + $0x80] sm:$0xff] }
   0x7   :  { %v199_v18 = vld [vmem:[%s607_s1 + $0x88] sm:$0xff]  ;;  %v196_v19 = vld [vmem:[%s607_s1 + $0x70] sm:$0xff]  ;;  %v78_v20 = vadd.f32 %v15_v15, %v14_v14  ;;  %v17_v21 = vld [vmem:[%s608_s0 + $0x18] sm:$0xff] }
   0x8   :  { %246 = vmatpush.msra.mxu0 %v206_v6  ;;  %266 = vmatpush.msra.mxu1 %v207_v7  ;;  %v22_v22 = vld [vmem:[%s608_s0 + $0x40] sm:$0xff]  ;;  %v23_v23 = vld [vmem:[%s608_s0 + $0x48] sm:$0xff]  ;;  %v197_v24 = vld [vmem:[%s607_s1 + $0x78] sm:$0xff] }
   0x9   :  { %v194_v25 = vld [vmem:[%s607_s1 + $0x60] sm:$0xff]  ;;  %v24_v26 = vld [vmem:[%s608_s0 + $0x50] sm:$0xff]  ;;  %v79_v27 = vadd.f32 %v78_v20, %v16_v16  ;;  %v91_v28 = vadd.f32 %v23_v23, %v22_v22  ;;  %v195_v29 = vld [vmem:[%s607_s1 + $0x68] sm:$0xff] }
   0xa   :  { %247 = vmatpush.msra.mxu0 %v204_v8  ;;  %267 = vmatpush.msra.mxu1 %v205_v9  ;;  %v18_v30 = vld [vmem:[%s608_s0 + $0x20] sm:$0xff]  ;;  %v25_v31 = vld [vmem:[%s608_s0 + $0x58] sm:$0xff]  ;;  %v192_v32 = vld [vmem:[%s607_s1 + $0x50] sm:$0xff] }
   0xb   :  { %v30_v33 = vld [vmem:[%s608_s0 + $0x80] sm:$0xff]  ;;  %v31_v34 = vld [vmem:[%s608_s0 + $0x88] sm:$0xff]  ;;  %v32_v35 = vld [vmem:[%s608_s0 + $0x90] sm:$0xff]  ;;  %v80_v36 = vadd.f32 %v79_v27, %v17_v21  ;;  %v92_v37 = vadd.f32 %v91_v28, %v24_v26 }
   0xc   :  { %248 = vmatpush.msra.mxu0 %v202_v10  ;;  %268 = vmatpush.msra.mxu1 %v203_v11  ;;  %v193_v38 = vld [vmem:[%s607_s1 + $0x58] sm:$0xff]  ;;  %v19_v39 = vld [vmem:[%s608_s0 + $0x28] sm:$0xff]  ;;  %v26_v40 = vld [vmem:[%s608_s0 + $0x60] sm:$0xff]  ;;  %v104_v41 = vadd.f32 %v31_v34, %v30_v33 }
   0xd   :  { %v190_v42 = vld [vmem:[%s607_s1 + $0x40] sm:$0xff]  ;;  %v191_v43 = vld [vmem:[%s607_s1 + $0x48] sm:$0xff]  ;;  %v20_v44 = vld [vmem:[%s608_s0 + $0x30] sm:$0xff]  ;;  %v81_v47 = vadd.f32 %v80_v36, %v18_v30  ;;  %v93_v48 = vadd.f32 %v92_v37, %v25_v31 }
   0xe   :  { %249 = vmatpush.msra.mxu0 %v200_v12  ;;  %269 = vmatpush.msra.mxu1 %v201_v13  ;;  %v33_v45 = vld [vmem:[%s608_s0 + $0x98] sm:$0xff]  ;;  %v38_v46 = vld [vmem:[%s608_s0 + $0xc0] sm:$0xff]  ;;  %v27_v49 = vld [vmem:[%s608_s0 + $0x68] sm:$0xff]  ;;  %v105_v52 = vadd.f32 %v104_v41, %v32_v35 }
   0xf   :  { %v39_v50 = vld [vmem:[%s608_s0 + $0xc8] sm:$0xff]  ;;  %v40_v51 = vld [vmem:[%s608_s0 + $0xd0] sm:$0xff]  ;;  %v189_v54 = vld [vmem:[%s607_s1 + $0x38] sm:$0xff]  ;;  %v82_v58 = vadd.f32 %v81_v47, %v19_v39  ;;  %v94_v59 = vadd.f32 %v93_v48, %v26_v40 }
  0x10   :  { %250 = vmatpush.msra.mxu0 %v198_v17  ;;  %270 = vmatpush.msra.mxu1 %v199_v18  ;;  %v188_v53 = vld [vmem:[%s607_s1 + $0x30] sm:$0xff]  ;;  %v21_v55 = vld [vmem:[%s608_s0 + $0x38] sm:$0xff]  ;;  %v34_v57 = vld [vmem:[%s608_s0 + $0xa0] sm:$0xff]  ;;  %v117_v60 = vadd.f32 %v39_v50, %v38_v46  ;;  %v106_v0 = vadd.f32 %v105_v52, %v33_v45 }
  0x11   :  { %v28_v56 = vld [vmem:[%s608_s0 + $0x70] sm:$0xff]  ;;  %v41_v61 = vld [vmem:[%s608_s0 + $0xd8] sm:$0xff]  ;;  %v46_v62 = vld [vmem:[%s608_s0 + $0x100] sm:$0xff]  ;;  %v83_v6 = vadd.f32 %v82_v58, %v20_v44  ;;  %v95_v7 = vadd.f32 %v94_v59, %v27_v49 }
  0x12   :  { %251 = vmatpush.msra.mxu0 %v196_v19  ;;  %271 = vmatpush.msra.mxu1 %v197_v24  ;;  %v47_v63 = vld [vmem:[%s608_s0 + $0x108] sm:$0xff]  ;;  %v186_v1 = vld [vmem:[%s607_s1 + $0x20] sm:$0xff]  ;;  %v29_v3 = vld [vmem:[%s608_s0 + $0x78] sm:$0xff]  ;;  %v118_v8 = vadd.f32 %v117_v60, %v40_v51  ;;  %v107_v13 = vadd.f32 %v106_v0, %v34_v57 }
  0x13   :  { %v187_v2 = vld [vmem:[%s607_s1 + $0x28] sm:$0xff]  ;;  %v48_v5 = vld [vmem:[%s608_s0 + $0x110] sm:$0xff]  ;;  %v130_v9 = vadd.f32 %v47_v63, %v46_v62  ;;  %v42_v11 = vld [vmem:[%s608_s0 + $0xe0] sm:$0xff]  ;;  %v84_v18 = vadd.f32 %v83_v6, %v21_v55  ;;  %v96_v19 = vadd.f32 %v95_v7, %v28_v56 }
  0x14   :  { %252 = vmatpush.msra.mxu0 %v194_v25  ;;  %272 = vmatpush.msra.mxu1 %v195_v29  ;;  %v35_v4 = vld [vmem:[%s608_s0 + $0xa8] sm:$0xff]  ;;  %v36_v10 = vld [vmem:[%s608_s0 + $0xb0] sm:$0xff]  ;;  %v49_v12 = vld [vmem:[%s608_s0 + $0x118] sm:$0xff]  ;;  %v119_v20 = vadd.f32 %v118_v8, %v41_v61 }
  0x15   :  { %v184_v14 = vld [vmem:[%s607_s1 + $0x10] sm:$0xff]  ;;  %v54_v15 = vld [vmem:[%s608_s0 + $0x140] sm:$0xff]  ;;  %v55_v16 = vld [vmem:[%s608_s0 + $0x148] sm:$0xff]  ;;  %v131_v21 = vadd.f32 %v130_v9, %v48_v5  ;;  %v108_v25 = vadd.f32 %v107_v13, %v35_v4  ;;  %v97_v33 = vadd.f32 %v96_v19, %v29_v3 }
  0x16   :  { %253 = vmatpush.msra.mxu0 %v192_v32  ;;  %273 = vmatpush.msra.mxu1 %v193_v38  ;;  %v56_v17 = vld [vmem:[%s608_s0 + $0x150] sm:$0xff]  ;;  %v185_v22 = vld [vmem:[%s607_s1 + $0x18] sm:$0xff]  ;;  %v43_v23 = vld [vmem:[%s608_s0 + $0xe8] sm:$0xff]  ;;  %v143_v26 = vadd.f32 %v55_v16, %v54_v15  ;;  %v85_v32 = vrot.slane %v84_v18, 4  ;;  %v120_v34 = vadd.f32 %v119_v20, %v42_v11 }
  0x17   :  { %v50_v24 = vld [vmem:[%s608_s0 + $0x120] sm:$0xff]  ;;  %v183_v28 = vld [vmem:[%s607_s1 + $0x8] sm:$0xff]  ;;  %v37_v29 = vld [vmem:[%s608_s0 + $0xb8] sm:$0xff]  ;;  %v132_v35 = vadd.f32 %v131_v21, %v49_v12  ;;  %v109_v39 = vadd.f32 %v108_v25, %v36_v10  ;;  %v98_v45 = vrot.slane %v97_v33, 4 }
  0x18   :  { %254 = vmatpush.msra.mxu0 %v190_v42  ;;  %274 = vmatpush.msra.mxu1 %v191_v43  ;;  %v182_v27 = vld [vmem:[%s607_s1] sm:$0xff]  ;;  %v57_v30 = vld [vmem:[%s608_s0 + $0x158] sm:$0xff]  ;;  %v44_v36 = vld [vmem:[%s608_s0 + $0xf0] sm:$0xff]  ;;  %v144_v40 = vadd.f32 %v143_v26, %v56_v17  ;;  %v86_v44 = vadd.f32 %v85_v32, %v84_v18  ;;  %v121_v46 = vadd.f32 %v120_v34, %v43_v23 }
  0x19   :  { %v62_v31 = vld [vmem:[%s608_s0 + $0x180] sm:$0xff]  ;;  %v51_v37 = vld [vmem:[%s608_s0 + $0x128] sm:$0xff]  ;;  %v45_v41 = vld [vmem:[%s608_s0 + $0xf8] sm:$0xff]  ;;  %v133_v47 = vadd.f32 %v132_v35, %v50_v24  ;;  %v110_v51 = vadd.f32 %v109_v39, %v37_v29  ;;  %v99_v58 = vadd.f32 %v98_v45, %v97_v33 }
  0x1a   :  { %255 = vmatpush.msra.mxu0 %v188_v53  ;;  %275 = vmatpush.msra.mxu1 %v189_v54  ;;  %v63_v38 = vld [vmem:[%s608_s0 + $0x188] sm:$0xff]  ;;  %v58_v42 = vld [vmem:[%s608_s0 + $0x160] sm:$0xff]  ;;  %v64_v43 = vld [vmem:[%s608_s0 + $0x190] sm:$0xff]  ;;  %v145_v52 = vadd.f32 %v144_v40, %v57_v30  ;;  %v87_v57 = vrot.slane %v86_v44, 2  ;;  %v122_v59 = vadd.f32 %v121_v46, %v44_v36 }
  0x1b   :  { %v52_v48 = vld [vmem:[%s608_s0 + $0x130] sm:$0xff]  ;;  %v70_v49 = vld [vmem:[%s608_s0 + $0x1c0] sm:$0xff]  ;;  %v71_v50 = vld [vmem:[%s608_s0 + $0x1c8] sm:$0xff]  ;;  %v156_v53 = vadd.f32 %v63_v38, %v62_v31  ;;  %v134_v60 = vadd.f32 %v133_v47, %v51_v37  ;;  %v111_v62 = vrot.slane %v110_v51, 4  ;;  %v100_v6 = vrot.slane %v99_v58, 2 }
  0x1c   :  { %256 = vmatpush.msra.mxu0 %v186_v1  ;;  %276 = vmatpush.msra.mxu1 %v187_v2  ;;  %v59_v54 = vld [vmem:[%s608_s0 + $0x168] sm:$0xff]  ;;  %v65_v55 = vld [vmem:[%s608_s0 + $0x198] sm:$0xff]  ;;  %v72_v56 = vld [vmem:[%s608_s0 + $0x1d0] sm:$0xff]  ;;  %v146_v63 = vadd.f32 %v145_v52, %v58_v42  ;;  %v169_v1 = vadd.f32 %v71_v50, %v70_v49  ;;  %v88_v5 = vadd.f32 %v87_v57, %v86_v44 }
  0x1d   :  { %v53_v61 = vld [vmem:[%s608_s0 + $0x138] sm:$0xff]  ;;  %v157_v0 = vadd.f32 %v156_v53, %v64_v43  ;;  %v60_v2 = vld [vmem:[%s608_s0 + $0x170] sm:$0xff]  ;;  %v66_v3 = vld [vmem:[%s608_s0 + $0x1a0] sm:$0xff]  ;;  %v123_v7 = vadd.f32 %v122_v59, %v45_v41  ;;  %v135_v8 = vadd.f32 %v134_v60, %v52_v48  ;;  %v112_v9 = vadd.f32 %v111_v62, %v110_v51 }
  0x1e   :  { %257 = vmatpush.msra.mxu0 %v184_v14  ;;  %277 = vmatpush.msra.mxu1 %v185_v22  ;;  %v73_v4 = vld [vmem:[%s608_s0 + $0x1d8] sm:$0xff]  ;;  %v147_v10 = vadd.f32 %v146_v63, %v59_v54  ;;  %v170_v12 = vadd.f32 %v169_v1, %v72_v56  ;;  %v67_v14 = vld [vmem:[%s608_s0 + $0x1a8] sm:$0xff]  ;;  %v74_v15 = vld [vmem:[%s608_s0 + $0x1e0] sm:$0xff]  ;;  %v89_v16 = vrot.slane %v88_v5, 1  ;;  %v101_v17 = vadd.f32 %v100_v6, %v99_v58 }
  0x1f   :  { %v158_v11 = vadd.f32 %v157_v0, %v65_v55  ;;  %v61_v13 = vld [vmem:[%s608_s0 + $0x178] sm:$0xff]  ;;  %v124_v18 = vrot.slane %v123_v7, 4  ;;  %v136_v19 = vadd.f32 %v135_v8, %v53_v61  ;;  %v113_v20 = vrot.slane %v112_v9, 2  ;;  %v68_v24 = vld [vmem:[%s608_s0 + $0x1b0] sm:$0xff]  ;;  %v75_v25 = vld [vmem:[%s608_s0 + $0x1e8] sm:$0xff] }
  0x20   :  { %258 = vmatpush.msra.mxu0 %v182_v27  ;;  %278 = vmatpush.msra.mxu1 %v183_v28  ;;  %v148_v21 = vadd.f32 %v147_v10, %v60_v2  ;;  %v171_v23 = vadd.f32 %v170_v12, %v73_v4  ;;  %v90_v26 = vadd.f32 %v89_v16, %v88_v5  ;;  %v102_v27 = vrot.slane %v101_v17, 1  ;;  %v69_v34 = vld [vmem:[%s608_s0 + $0x1b8] sm:$0xff]  ;;  %v76_v35 = vld [vmem:[%s608_s0 + $0x1f0] sm:$0xff] }
  0x21   :  { %v159_v22 = vadd.f32 %v158_v11, %v66_v3  ;;  %v125_v28 = vadd.f32 %v124_v18, %v123_v7  ;;  %v137_v29 = vrot.slane %v136_v19, 4  ;;  %v114_v30 = vadd.f32 %v113_v20, %v112_v9  ;;  %v77_v43 = vld [vmem:[%s608_s0 + $0x1f8] sm:$0xff] }
  0x22   :  { %v149_v31 = vadd.f32 %v148_v21, %v61_v13  ;;  %v172_v33 = vadd.f32 %v171_v23, %v74_v15  ;;  %v103_v36 = vadd.f32 %v102_v27, %v101_v17  ;;  %v214_v15 = vld [vmem:[%s609_s2] sm:$0x3] }
  0x23   :  { %v160_v32 = vadd.f32 %v159_v22, %v67_v14  ;;  %v126_v37 = vrot.slane %v125_v28, 2  ;;  %v138_v38 = vadd.f32 %v137_v29, %v136_v19  ;;  %v115_v39 = vrot.slane %v114_v30, 1 }
  0x24   :  { %v150_v40 = vrot.slane %v149_v31, 4  ;;  %v173_v42 = vadd.f32 %v172_v33, %v75_v25  ;;  %v229_v46 = vsel %vm228_vm0, %v103_v36, %v90_v26  ;;  %v216_v16 = vperm.slane %v214_v15, 0 }
  0x25   :  { %v161_v41 = vadd.f32 %v160_v32, %v68_v24  ;;  %v127_v44 = vadd.f32 %v126_v37, %v125_v28  ;;  %v139_v45 = vrot.slane %v138_v38, 2  ;;  %v116_v47 = vadd.f32 %v115_v39, %v114_v30 }
  0x26   :  { %v151_v48 = vadd.f32 %v150_v40, %v149_v31  ;;  %v174_v50 = vadd.f32 %v173_v42, %v76_v35  ;;  %v217_v17 = vperm.slane %v214_v15, 1 }
  0x27   :  { %v162_v49 = vadd.f32 %v161_v41, %v69_v34  ;;  %v128_v51 = vrot.slane %v127_v44, 1  ;;  %v140_v52 = vadd.f32 %v139_v45, %v138_v38  ;;  %v231_v56 = vsel %vm230_vm1, %v116_v47, %v229_v46 }
  0x28   :  { %v152_v53 = vrot.slane %v151_v48, 2  ;;  %v175_v55 = vadd.f32 %v174_v50, %v77_v43 }
  0x29   :  { %v163_v54 = vrot.slane %v162_v49, 4  ;;  %v129_v57 = vadd.f32 %v128_v51, %v127_v44  ;;  %v141_v58 = vrot.slane %v140_v52, 1 }
  0x2a   :  { %v153_v59 = vadd.f32 %v152_v53, %v151_v48  ;;  %v176_v61 = vrot.slane %v175_v55, 4 }
  0x2b   :  { %v164_v60 = vadd.f32 %v163_v54, %v162_v49  ;;  %v142_v62 = vadd.f32 %v141_v58, %v140_v52  ;;  %v233_v63 = vsel %vm232_vm2, %v129_v57, %v231_v56 }
  0x2c   :  { %v154_v0 = vrot.slane %v153_v59, 1  ;;  %v177_v2 = vadd.f32 %v176_v61, %v175_v55 }
  0x2d   :  { %v165_v1 = vrot.slane %v164_v60, 2  ;;  %v235_v6 = vsel %vm234_vm3, %v142_v62, %v233_v63 }
  0x2e   :  { %v155_v3 = vadd.f32 %v154_v0, %v153_v59  ;;  %v178_v5 = vrot.slane %v177_v2, 2 }
  0x2f   :  { %v166_v4 = vadd.f32 %v165_v1, %v164_v60 }
  0x30   :  { %v179_v8 = vadd.f32 %v178_v5, %v177_v2  ;;  %v237_v9 = vsel %vm236_vm4, %v155_v3, %v235_v6 }
  0x31   :  { %v167_v7 = vrot.slane %v166_v4, 1 }
  0x32   :  { %v180_v11 = vrot.slane %v179_v8, 1 }
  0x33   :  { %v168_v10 = vadd.f32 %v167_v7, %v166_v4 }
  0x34   :  { %v181_v12 = vadd.f32 %v180_v11, %v179_v8 }
  0x35   :  { %v239_v13 = vsel %vm238_vm5, %v168_v10, %v237_v9 }
  0x36   :  { %v241_v14 = vsel %vm240_vm6, %v181_v12, %v239_v13 }
  0x37   :  { %259 = vmatmul.f32.vlgmr.msra.gmra.mxu0 %v241_v14  ;;  %279 = vmatmul.f32.vlgmr.msra.gmra.mxu1 %v241_v14 }
  0xb4   :  { %v260_v18 = vpop.f32.mrf.mxu0  ;;  %v280_v19 = vpop.f32.mrf.mxu1 }
  0xb5   :  { %v261_v20 = vadd.f32 %v260_v18, %v216_v16  ;;  %v281_v21 = vadd.f32 %v280_v19, %v217_v17 }
  0xb7   :  { %283 = vst [vmem:[%s610_s3] sm:$0xff] %v261_v20 }
  0xb8   :  { %284 = vst [vmem:[%s610_s3 + $0x8] sm:$0xff] %v281_v21 }

</bundles_post_ra>
